<compile_context>
chip_gen: v5e
topology: v5e:2x2
jax: 0.10.0
libtpu: 0.0.40
codegen_flags: <defaults>
</compile_context>

<pallas_src>
import jax
import jax.numpy as jnp
from jax import lax
from jax.experimental import pallas as pl
from jax.experimental.pallas import tpu as pltpu

# ---- module hyper-parameters (globals in sema2insts.py; chosen here) --------
NUM_OPS = 16
MAX_BITWIDTH = 64
MAX_NUM_PARAMS = 3
EMB_SIZE = 128
NEG_SLOPE = 0.01  # nn.LeakyReLU default

TOTAL_ROWS = NUM_OPS + MAX_NUM_PARAMS * MAX_BITWIDTH  # 208 rows of folded table


def _round_up(x, m):
    return (x + m - 1) // m * m


# ---------------------------- Pallas kernel ---------------------------------
def _opemb_kernel(ids_ref, t_all_ref, b1_ref, w2_ref, b2_ref, o_ref):
    tile_n = ids_ref.shape[0]
    # Sum-of-one-hots selector (TILE_N, TOTAL_ROWS).  The op / param-k id
    # ranges are disjoint (pre-offset by the wrapper), so
    #   sel @ t_all == T_op[op] + T_p0[p0] + T_p1[p1] + T_p2[p2]
    # i.e. the gathers plus the folded first Linear, done in one MXU pass.
    iota = lax.broadcasted_iota(jnp.int32, (tile_n, TOTAL_ROWS), 1)
    ids = ids_ref[...]                                    # (TILE_N, 1+P) int32
    sel = jnp.zeros((tile_n, TOTAL_ROWS), jnp.float32)
    for c in range(1 + MAX_NUM_PARAMS):
        sel = sel + (iota == ids[:, c:c + 1]).astype(jnp.float32)

    h = jnp.dot(sel, t_all_ref[...], preferred_element_type=jnp.float32)
    h = h + b1_ref[...]
    h = jnp.where(h > 0, h, NEG_SLOPE * h)                # LeakyReLU (f32 VPU)
    o = jnp.dot(h, w2_ref[...], preferred_element_type=jnp.float32)
    o_ref[...] = (o + b2_ref[...]).astype(o_ref.dtype)


def opemb_pallas(ids, t_all, b1, w2, b2, *, tile_n):
    """ids: (N_pad, 1+P) int32, pre-offset into the folded table."""
    n_pad = ids.shape[0]
    grid = (n_pad // tile_n,)
    flops = 2 * n_pad * EMB_SIZE * (TOTAL_ROWS + EMB_SIZE)
    bytes_accessed = 4 * (ids.size + t_all.size + b1.size + w2.size + b2.size
                          + n_pad * EMB_SIZE)
    return pl.pallas_call(
        _opemb_kernel,
        out_shape=jax.ShapeDtypeStruct((n_pad, EMB_SIZE), jnp.float32),
        grid_spec=pltpu.PrefetchScalarGridSpec(
            num_scalar_prefetch=0,
            grid=grid,
            in_specs=[
                pl.BlockSpec((tile_n, 1 + MAX_NUM_PARAMS), lambda i: (i, 0)),
                # Folded table + weights: constant index_map => VMEM-resident.
                pl.BlockSpec((TOTAL_ROWS, EMB_SIZE), lambda i: (0, 0)),
                pl.BlockSpec((1, EMB_SIZE), lambda i: (0, 0)),
                pl.BlockSpec((EMB_SIZE, EMB_SIZE), lambda i: (0, 0)),
                pl.BlockSpec((1, EMB_SIZE), lambda i: (0, 0)),
            ],
            out_specs=pl.BlockSpec((tile_n, EMB_SIZE), lambda i: (i, 0)),
        ),
        compiler_params=pltpu.CompilerParams(
            dimension_semantics=("parallel",)),
        cost_estimate=pl.CostEstimate(
            flops=flops, transcendentals=0, bytes_accessed=bytes_accessed),
    )(ids, t_all, b1, w2, b2)


# ------------------------- init + offline folding ----------------------------
def init_params(key):
    ks = jax.random.split(key, 6)
    in_f = EMB_SIZE * (1 + MAX_NUM_PARAMS)
    scale1 = 1.0 / jnp.sqrt(in_f)
    scale2 = 1.0 / jnp.sqrt(EMB_SIZE)
    return {
        "op_embs":    jax.random.normal(ks[0], (NUM_OPS, EMB_SIZE), jnp.float32),
        "param_embs": jax.random.normal(ks[1], (MAX_BITWIDTH, EMB_SIZE), jnp.float32),
        # stored as [in, out] (transposed vs torch nn.Linear.weight)
        "w1": jax.random.uniform(ks[2], (in_f, EMB_SIZE), jnp.float32, -scale1, scale1),
        "b1": jax.random.uniform(ks[3], (1, EMB_SIZE), jnp.float32, -scale1, scale1),
        "w2": jax.random.uniform(ks[4], (EMB_SIZE, EMB_SIZE), jnp.float32, -scale2, scale2),
        "b2": jax.random.uniform(ks[5], (1, EMB_SIZE), jnp.float32, -scale2, scale2),
    }


def fold_params(params):
    """Fold Linear1 into the embedding tables (algebraically identical)."""
    E = EMB_SIZE
    w1 = params["w1"]
    hi = jax.lax.Precision.HIGHEST  # one-time precompute: full f32 accuracy
    t_op = jnp.dot(params["op_embs"], w1[:E], precision=hi)
    t_ps = [jnp.dot(params["param_embs"], w1[E * (k + 1): E * (k + 2)],
                    precision=hi)
            for k in range(MAX_NUM_PARAMS)]
    t_all = jnp.concatenate([t_op] + t_ps, axis=0)        # (TOTAL_ROWS, E)
    return {"t_all": t_all, "b1": params["b1"],
            "w2": params["w2"], "b2": params["b2"]}


# ---------------------------- OpEmb forward ----------------------------------
def op_emb_forward(folded, op_ids, param_ids_list):
    """
    op_ids          : (N,) int32 indices into op embedding table
    param_ids_list  : list (len MAX_NUM_PARAMS) of (N,) int32 indices
    returns         : (N, EMB_SIZE) float32
    """
    n = op_ids.shape[0]
    tile_n = min(256, _round_up(max(n, 8), 8))            # MXU-friendly rows
    n_pad = _round_up(max(n, 1), tile_n)

    # Offset each id column into its disjoint slice of the combined table.
    cols = [op_ids.astype(jnp.int32)]
    for k, p in enumerate(param_ids_list):
        cols.append(p.astype(jnp.int32) + NUM_OPS + k * MAX_BITWIDTH)
    ids = jnp.stack(cols, axis=1)                          # (N, 1+P)
    ids = jnp.pad(ids, ((0, n_pad - n), (0, 0)))           # pad rows (ignored)

    out = opemb_pallas(ids, folded["t_all"], folded["b1"],
                       folded["w2"], folded["b2"], tile_n=tile_n)
    return out[:n]


# ------------------------------ reference ------------------------------------
def op_emb_reference(params, op_ids, param_ids_list):
    op_emb = params["op_embs"][op_ids]
    p_embs = [params["param_embs"][p] for p in param_ids_list]
    x = jnp.concatenate([op_emb] + p_embs, axis=1)
    h = x @ params["w1"] + params["b1"]
    h = jnp.where(h > 0, h, NEG_SLOPE * h)
    return h @ params["w2"] + params["b2"]


if __name__ == "__main__":
    key = jax.random.PRNGKey(0)
    kp, kop, kpar = jax.random.split(key, 3)

    params = init_params(kp)
    folded = fold_params(params)

    N = 8  # batch of (op, params) tuples
    op_ids = jax.random.randint(kop, (N,), 0, NUM_OPS, dtype=jnp.int32)
    param_keys = jax.random.split(kpar, MAX_NUM_PARAMS)
    param_ids = [
        jax.random.randint(k, (N,), 0, MAX_BITWIDTH, dtype=jnp.int32)
        for k in param_keys
    ]

    fwd = jax.jit(op_emb_forward)
    out = jax.block_until_ready(fwd(folded, op_ids, param_ids))

    ref = op_emb_reference(params, op_ids, param_ids)
    assert out.shape == (N, EMB_SIZE), out.shape
    # Tolerance loosened vs. the pre-fold version: folding reassociates the
    # first Linear's reduction and TPU matmuls may use reduced-precision
    # passes, so reference/kernel rounding is no longer bit-correlated.
    assert jnp.allclose(out, ref, atol=1e-2, rtol=1e-2), (
        float(jnp.max(jnp.abs(out - ref))))

    print("KERNEL_OK")
</pallas_src>

<mosaic_0001>
module attributes {stable_mosaic.version = 11 : i64} {
  func.func @_opemb_kernel(%arg0: i32, %arg1: memref<8x4xi32, #tpu.memory_space<vmem>>, %arg2: memref<208x128xf32, #tpu.memory_space<vmem>>, %arg3: memref<1x128xf32, #tpu.memory_space<vmem>>, %arg4: memref<128x128xf32, #tpu.memory_space<vmem>>, %arg5: memref<1x128xf32, #tpu.memory_space<vmem>>, %arg6: memref<8x128xf32, #tpu.memory_space<vmem>>) attributes {dimension_semantics = [#tpu.dimension_semantics<parallel>], iteration_bounds = array<i64: 1>, scalar_prefetch = 0 : i64, scratch_operands = 0 : i64, tpu.core_type = #tpu.core_type<tc>, window_params = [{transform_indices = @transform_0, window_bounds = array<i64: 8, 4>}, {pipeline_mode = #tpu.pipeline_mode<synchronous>, transform_indices = @transform_1, window_bounds = array<i64: 208, 128>}, {pipeline_mode = #tpu.pipeline_mode<synchronous>, transform_indices = @transform_2, window_bounds = array<i64: 1, 128>}, {pipeline_mode = #tpu.pipeline_mode<synchronous>, transform_indices = @transform_3, window_bounds = array<i64: 128, 128>}, {pipeline_mode = #tpu.pipeline_mode<synchronous>, transform_indices = @transform_4, window_bounds = array<i64: 1, 128>}, {transform_indices = @transform_5, window_bounds = array<i64: 8, 128>}]} {
    %0 = tpu.iota {dimensions = array<i32: 1>} : vector<8x208xi32>
    %c0 = arith.constant 0 : index
    %c0_0 = arith.constant 0 : index
    %1 = vector.load %arg1[%c0, %c0_0] : memref<8x4xi32, #tpu.memory_space<vmem>>, vector<8x4xi32>
    %cst = arith.constant 0.000000e+00 : f32
    %2 = vector.broadcast %cst : f32 to vector<8x208xf32>
    %3 = vector.extract_strided_slice %1 {offsets = [0, 0], sizes = [8, 1], strides = [1, 1]} : vector<8x4xi32> to vector<8x1xi32>
    %4 = vector.broadcast %3 : vector<8x1xi32> to vector<8x208xi32>
    %5 = arith.cmpi eq, %0, %4 : vector<8x208xi32>
    %6 = arith.extui %5 : vector<8x208xi1> to vector<8x208xi32>
    %7 = arith.sitofp %6 : vector<8x208xi32> to vector<8x208xf32>
    %8 = arith.addf %2, %7 : vector<8x208xf32>
    %9 = vector.extract_strided_slice %1 {offsets = [0, 1], sizes = [8, 1], strides = [1, 1]} : vector<8x4xi32> to vector<8x1xi32>
    %10 = vector.broadcast %9 : vector<8x1xi32> to vector<8x208xi32>
    %11 = arith.cmpi eq, %0, %10 : vector<8x208xi32>
    %12 = arith.extui %11 : vector<8x208xi1> to vector<8x208xi32>
    %13 = arith.sitofp %12 : vector<8x208xi32> to vector<8x208xf32>
    %14 = arith.addf %8, %13 : vector<8x208xf32>
    %15 = vector.extract_strided_slice %1 {offsets = [0, 2], sizes = [8, 1], strides = [1, 1]} : vector<8x4xi32> to vector<8x1xi32>
    %16 = vector.broadcast %15 : vector<8x1xi32> to vector<8x208xi32>
    %17 = arith.cmpi eq, %0, %16 : vector<8x208xi32>
    %18 = arith.extui %17 : vector<8x208xi1> to vector<8x208xi32>
    %19 = arith.sitofp %18 : vector<8x208xi32> to vector<8x208xf32>
    %20 = arith.addf %14, %19 : vector<8x208xf32>
    %21 = vector.extract_strided_slice %1 {offsets = [0, 3], sizes = [8, 1], strides = [1, 1]} : vector<8x4xi32> to vector<8x1xi32>
    %22 = vector.broadcast %21 : vector<8x1xi32> to vector<8x208xi32>
    %23 = arith.cmpi eq, %0, %22 : vector<8x208xi32>
    %24 = arith.extui %23 : vector<8x208xi1> to vector<8x208xi32>
    %25 = arith.sitofp %24 : vector<8x208xi32> to vector<8x208xf32>
    %26 = arith.addf %20, %25 : vector<8x208xf32>
    %c0_1 = arith.constant 0 : index
    %c0_2 = arith.constant 0 : index
    %27 = vector.load %arg2[%c0_1, %c0_2] : memref<208x128xf32, #tpu.memory_space<vmem>>, vector<208x128xf32>
    %cst_3 = arith.constant dense<0.000000e+00> : vector<8x128xf32>
    %28 = tpu.matmul %26, %27, %cst_3 {dimension_numbers = #tpu.dot_dimension_numbers<[1], [0], [0], [1], [0, 0, 1, 1], [], []>} : vector<8x208xf32>, vector<208x128xf32>, vector<8x128xf32> -> vector<8x128xf32>
    %c0_4 = arith.constant 0 : index
    %c0_5 = arith.constant 0 : index
    %29 = vector.load %arg3[%c0_4, %c0_5] : memref<1x128xf32, #tpu.memory_space<vmem>>, vector<1x128xf32>
    %30 = vector.broadcast %29 : vector<1x128xf32> to vector<8x128xf32>
    %31 = arith.addf %28, %30 : vector<8x128xf32>
    %cst_6 = arith.constant 0.000000e+00 : f32
    %32 = vector.broadcast %cst_6 : f32 to vector<8x128xf32>
    %33 = arith.cmpf ogt, %31, %32 : vector<8x128xf32>
    %cst_7 = arith.constant 0.00999999977 : f32
    %34 = vector.broadcast %cst_7 : f32 to vector<8x128xf32>
    %35 = arith.mulf %34, %31 : vector<8x128xf32>
    %36 = arith.select %33, %31, %35 : vector<8x128xi1>, vector<8x128xf32>
    %c0_8 = arith.constant 0 : index
    %c0_9 = arith.constant 0 : index
    %37 = vector.load %arg4[%c0_8, %c0_9] : memref<128x128xf32, #tpu.memory_space<vmem>>, vector<128x128xf32>
    %cst_10 = arith.constant dense<0.000000e+00> : vector<8x128xf32>
    %38 = tpu.matmul %36, %37, %cst_10 {dimension_numbers = #tpu.dot_dimension_numbers<[1], [0], [0], [1], [0, 0, 1, 1], [], []>} : vector<8x128xf32>, vector<128x128xf32>, vector<8x128xf32> -> vector<8x128xf32>
    %c0_11 = arith.constant 0 : index
    %c0_12 = arith.constant 0 : index
    %39 = vector.load %arg5[%c0_11, %c0_12] : memref<1x128xf32, #tpu.memory_space<vmem>>, vector<1x128xf32>
    %40 = vector.broadcast %39 : vector<1x128xf32> to vector<8x128xf32>
    %41 = arith.addf %38, %40 : vector<8x128xf32>
    %c0_13 = arith.constant 0 : index
    %c0_14 = arith.constant 0 : index
    %42 = vector.load %arg6[%c0_13, %c0_14] : memref<8x128xf32, #tpu.memory_space<vmem>>, vector<8x128xf32>
    tpu.vector_store %arg6[%c0_13, %c0_14], %41 {strides = array<i32>} : memref<8x128xf32, #tpu.memory_space<vmem>>, vector<8x128xf32>,
    return
  }
  func.func @transform_0(%arg0: i32) -> (i32, i32) {
    %c0_i32 = arith.constant 0 : i32
    %c0_i32_0 = arith.constant 0 : i32
    return %arg0, %c0_i32 : i32, i32
  }
  func.func @transform_1(%arg0: i32) -> (i32, i32) {
    %c0_i32 = arith.constant 0 : i32
    %c0_i32_0 = arith.constant 0 : i32
    %c0_i32_1 = arith.constant 0 : i32
    return %c0_i32, %c0_i32_0 : i32, i32
  }
  func.func @transform_2(%arg0: i32) -> (i32, i32) {
    %c0_i32 = arith.constant 0 : i32
    %c0_i32_0 = arith.constant 0 : i32
    %c0_i32_1 = arith.constant 0 : i32
    return %c0_i32, %c0_i32_0 : i32, i32
  }
  func.func @transform_3(%arg0: i32) -> (i32, i32) {
    %c0_i32 = arith.constant 0 : i32
    %c0_i32_0 = arith.constant 0 : i32
    %c0_i32_1 = arith.constant 0 : i32
    return %c0_i32, %c0_i32_0 : i32, i32
  }
  func.func @transform_4(%arg0: i32) -> (i32, i32) {
    %c0_i32 = arith.constant 0 : i32
    %c0_i32_0 = arith.constant 0 : i32
    %c0_i32_1 = arith.constant 0 : i32
    return %c0_i32, %c0_i32_0 : i32, i32
  }
  func.func @transform_5(%arg0: i32) -> (i32, i32) {
    %c0_i32 = arith.constant 0 : i32
    %c0_i32_0 = arith.constant 0 : i32
    return %arg0, %c0_i32 : i32, i32
  }
}

</mosaic_0001>

<bundles_post_ra>
// kernel: op_emb_forward.1
= control target key start
LH: loop header
LB: loop body
LE: loop exit
PB: predicated region body
PF: predicated region fallthrough
CT: control target
= control target key end

     0   :  { %10 = vsyncpa [#allocation3], 0  ;;  %s401_s0 = inlined_call_operand.vmem [shape: s32[8,4], index: 0, kind: input, shape index: {}]   ;;  %s402_s1 = inlined_call_operand.hbm [shape: f32[208,128], index: 1, kind: input, shape index: {}]   ;;  %s403_s2 = inlined_call_operand.vmem [shape: f32[1,128], index: 2, kind: input, shape index: {}]   ;;  %s404_s3 = inlined_call_operand.hbm [shape: f32[128,128], index: 3, kind: input, shape index: {}]   ;;  %s405_s4 = inlined_call_operand.vmem [shape: f32[1,128], index: 4, kind: input, shape index: {}]   ;;  %s406_s5 = inlined_call_operand.hbm [shape: f32[8,128], index: 5, kind: output, shape index: {}]  }
   0x1   :  { %11 = vsyncpa [#allocation6], 0 }
   0x2   :  { %12 = vsyncpa [#allocation4], 0  ;;  %s19_s20 = sshll.u32 %s402_s1, 4  ;;  %s341_s21 = smov [#allocation2]   ;;  %s20_s20 = int_to_ptr.hbm [resolvable:$true] %s19_s20 }
   0x3   :  { %s21_s22 = sshll.u32 %s341_s21, 4  ;;  %s34_s25 = sshll.u32 %s404_s3, 4  ;;  %s22_s22 = int_to_ptr.vmem [resolvable:$true] %s21_s22  ;;  %s35_s25 = int_to_ptr.hbm [resolvable:$true] %s34_s25 }
   0x4   :  { %s342_s26 = smov 128   ;;  %s343_s27 = smov 8  }
   0x5   :  { %27 = dma.hbm_to_vmem [thread:$0]  %s20_s20, 3328, %s22_s22, [#allocation3], %s342_s26, %s342_s26, %s343_s27  }
   0x6   :  { %s344_s28 = smov [#allocation5]  }
   0x7   :  { %s36_s29 = sshll.u32 %s344_s28, 4  ;;  %s37_s29 = int_to_ptr.vmem [resolvable:$true] %s36_s29 }
   0x8   :  { %42 = dma.hbm_to_vmem [thread:$0]  %s35_s25, 2048, %s37_s29, [#allocation6], %s342_s26, %s342_s26, %s343_s27  }
   0x9   :  { %335 = dma.done.wait [#allocation3], 3328  }
   0xa   :  { %336 = vsyncadd [#allocation3], 4294963968 }
   0xb   :  { %337 = dma.done.wait [#allocation6], 2048  }
   0xc   :  { %338 = vsyncadd [#allocation6], 4294965248  ;;  %v345_v0 = vmov 0   ;;  %v346_v1 = vmov 2   ;;  %v56_v2 = vld [vmem:[%s401_s0] sm:$0xff]  ;;  %v116_v3 = vld [vmem:[#allocation2 + $0x78] sm:$0xff]  ;;  %v53_v37 = vlaneseq }
   0xd   :  { %256 = vset.pattern.permute.xlu0 %v345_v0  ;;  %258 = vset.pattern.permute.xlu1 %v346_v1  ;;  %v115_v4 = vld [vmem:[#allocation2 + $0x70] sm:$0xff]  ;;  %v126_v5 = vld [vmem:[#allocation2 + $0xc8] sm:$0xff]  ;;  %v113_v7 = vld [vmem:[#allocation2 + $0x60] sm:$0xff]  ;;  %v347_v9 = vmov 1   ;;  %v348_v10 = vmov 3   ;;  %v349_v50 = vmov 0.0  }
   0xe   :  { %58 = vperm.xlu0 %256, %v56_v2   ;;  %80 = vperm.xlu1 %258, %v56_v2   ;;  %v114_v6 = vld [vmem:[#allocation2 + $0x68] sm:$0xff]  ;;  %v112_v8 = vld [vmem:[#allocation2 + $0x58] sm:$0xff]  ;;  %v111_v11 = vld [vmem:[#allocation2 + $0x50] sm:$0xff]  ;;  %v54_v40 = vand.u32 127, %v53_v37  ;;  %vm131_vm8 = vcmask 654336   ;;  %s350_s8 = smov [#allocation7]  }
   0xf   :  { %135 = vmatpush.msra.mxu0 %v116_v3  ;;  %161 = vmatpush.msra.mxu1 %v126_v5  ;;  %v110_v12 = vld [vmem:[#allocation2 + $0x48] sm:$0xff]  ;;  %v109_v13 = vld [vmem:[#allocation2 + $0x40] sm:$0xff]  ;;  %v108_v15 = vld [vmem:[#allocation2 + $0x38] sm:$0xff]  ;;  %s224_s9 = sshll.u32 %s350_s8, 4  ;;  %s226_s12 = sshll.u32 %s406_s5, 4  ;;  %s225_s9 = int_to_ptr.vmem [resolvable:$true] %s224_s9  ;;  %s227_s12 = int_to_ptr.hbm [resolvable:$true] %s226_s12 }
  0x10   :  { %v125_v14 = vld [vmem:[#allocation2 + $0xc0] sm:$0xff]  ;;  %v124_v16 = vld [vmem:[#allocation2 + $0xb8] sm:$0xff]  ;;  %v107_v17 = vld [vmem:[#allocation2 + $0x30] sm:$0xff]  ;;  %v55_v45 = vadd.s32 128, %v54_v40 }
  0x11   :  { %136 = vmatpush.msra.mxu0 %v115_v4  ;;  %162 = vmatpush.msra.mxu1 %v125_v14  ;;  %v123_v18 = vld [vmem:[#allocation2 + $0xb0] sm:$0xff]  ;;  %v106_v19 = vld [vmem:[#allocation2 + $0x28] sm:$0xff]  ;;  %v105_v21 = vld [vmem:[#allocation2 + $0x20] sm:$0xff] }
  0x12   :  { %v122_v20 = vld [vmem:[#allocation2 + $0xa8] sm:$0xff]  ;;  %v121_v22 = vld [vmem:[#allocation2 + $0xa0] sm:$0xff]  ;;  %v104_v23 = vld [vmem:[#allocation2 + $0x18] sm:$0xff] }
  0x13   :  { %137 = vmatpush.msra.mxu0 %v114_v6  ;;  %163 = vmatpush.msra.mxu1 %v124_v16  ;;  %v120_v24 = vld [vmem:[#allocation2 + $0x98] sm:$0xff]  ;;  %v103_v25 = vld [vmem:[#allocation2 + $0x10] sm:$0xff]  ;;  %v102_v27 = vld [vmem:[#allocation2 + $0x8] sm:$0xff] }
  0x14   :  { %v119_v26 = vld [vmem:[#allocation2 + $0x90] sm:$0xff]  ;;  %v118_v28 = vld [vmem:[#allocation2 + $0x88] sm:$0xff]  ;;  %v101_v29 = vld [vmem:[#allocation2] sm:$0xff] }
  0x15   :  { %138 = vmatpush.msra.mxu0 %v113_v7  ;;  %164 = vmatpush.msra.mxu1 %v123_v18  ;;  %v117_v30 = vld [vmem:[#allocation2 + $0x80] sm:$0xff]  ;;  %v193_v31 = vld [vmem:[#allocation5 + $0x78] sm:$0xff]  ;;  %v191_v33 = vld [vmem:[#allocation5 + $0x68] sm:$0xff] }
  0x16   :  { %257 = vset.pattern.permute.xlu0 %v347_v9  ;;  %259 = vset.pattern.permute.xlu1 %v348_v10  ;;  %v192_v32 = vld [vmem:[#allocation5 + $0x70] sm:$0xff]  ;;  %v190_v34 = vld [vmem:[#allocation5 + $0x60] sm:$0xff]  ;;  %v189_v35 = vld [vmem:[#allocation5 + $0x58] sm:$0xff] }
  0x17   :  { %69 = vperm.xlu0 %257, %v56_v2   ;;  %91 = vperm.xlu1 %259, %v56_v2   ;;  %v188_v36 = vld [vmem:[#allocation5 + $0x50] sm:$0xff]  ;;  %v187_v38 = vld [vmem:[#allocation5 + $0x48] sm:$0xff]  ;;  %v186_v39 = vld [vmem:[#allocation5 + $0x40] sm:$0xff] }
  0x18   :  { %139 = vmatpush.msra.mxu0 %v112_v8  ;;  %165 = vmatpush.msra.mxu1 %v122_v20  ;;  %v185_v43 = vld [vmem:[#allocation5 + $0x38] sm:$0xff]  ;;  %v184_v44 = vld [vmem:[#allocation5 + $0x30] sm:$0xff]  ;;  %v183_v46 = vld [vmem:[#allocation5 + $0x28] sm:$0xff] }
  0x19   :  { %198 = vmatpush.msra.mxu2 %v193_v31  ;;  %v182_v47 = vld [vmem:[#allocation5 + $0x20] sm:$0xff]  ;;  %v181_v1 = vld [vmem:[#allocation5 + $0x18] sm:$0xff]  ;;  %v180_v2 = vld [vmem:[#allocation5 + $0x10] sm:$0xff] }
  0x1a   :  { %140 = vmatpush.msra.mxu0 %v111_v11  ;;  %166 = vmatpush.msra.mxu1 %v121_v22  ;;  %v179_v3 = vld [vmem:[#allocation5 + $0x8] sm:$0xff]  ;;  %v178_v4 = vld [vmem:[#allocation5] sm:$0xff]  ;;  %v261_v5 = vld [vmem:[%s403_s2] ss:$0 sm:$0xff] }
  0x1b   :  { %199 = vmatpush.msra.mxu2 %v192_v32 }
  0x1c   :  { %141 = vmatpush.msra.mxu0 %v110_v12  ;;  %167 = vmatpush.msra.mxu1 %v120_v24  ;;  %v262_v12 = vld [vmem:[%s405_s4] ss:$0 sm:$0xff] }
  0x1d   :  { %200 = vmatpush.msra.mxu2 %v191_v33 }
  0x1e   :  { %142 = vmatpush.msra.mxu0 %v109_v13  ;;  %168 = vmatpush.msra.mxu1 %v119_v26 }
  0x1f   :  { %260 = vset.pattern.permute.xlu0 %v348_v10  ;;  %201 = vmatpush.msra.mxu2 %v190_v34 }
  0x20   :  { %143 = vmatpush.msra.mxu0 %v108_v15  ;;  %169 = vmatpush.msra.mxu1 %v118_v28 }
  0x21   :  { %202 = vmatpush.msra.mxu2 %v189_v35 }
  0x22   :  { %144 = vmatpush.msra.mxu0 %v107_v17  ;;  %170 = vmatpush.msra.mxu1 %v117_v30 }
  0x23   :  { %203 = vmatpush.msra.mxu2 %v188_v36 }
  0x24   :  { %145 = vmatpush.msra.mxu0 %v106_v19 }
  0x25   :  { %204 = vmatpush.msra.mxu2 %v187_v38 }
  0x26   :  { %146 = vmatpush.msra.mxu0 %v105_v21 }
  0x27   :  { %205 = vmatpush.msra.mxu2 %v186_v39 }
  0x28   :  { %147 = vmatpush.msra.mxu0 %v104_v23 }
  0x29   :  { %206 = vmatpush.msra.mxu2 %v185_v43 }
  0x2a   :  { %148 = vmatpush.msra.mxu0 %v103_v25 }
  0x2b   :  { %207 = vmatpush.msra.mxu2 %v184_v44 }
  0x2c   :  { %149 = vmatpush.msra.mxu0 %v102_v27 }
  0x2d   :  { %208 = vmatpush.msra.mxu2 %v183_v46 }
  0x2e   :  { %150 = vmatpush.msra.mxu0 %v101_v29 }
  0x2f   :  { %209 = vmatpush.msra.mxu2 %v182_v47 }
  0x31   :  { %210 = vmatpush.msra.mxu2 %v181_v1 }
  0x33   :  { %211 = vmatpush.msra.mxu2 %v180_v2 }
  0x35   :  { %212 = vmatpush.msra.mxu2 %v179_v3 }
  0x37   :  { %213 = vmatpush.msra.mxu2 %v178_v4 }
  0x80   :  { %v59_v41 = vpop.permute.xlu0 %58  ;;  %v81_v42 = vpop.permute.xlu1 %80 }
  0x81   :  { %vm60_vm0 = vcmp.eq.s32.totalorder %v54_v40, %v59_v41  ;;  %vm61_vm1 = vcmp.eq.s32.totalorder %v55_v45, %v59_v41  ;;  %vm82_vm2 = vcmp.eq.s32.totalorder %v54_v40, %v81_v42  ;;  %vm83_vm3 = vcmp.eq.s32.totalorder %v55_v45, %v81_v42 }
  0x82   :  { %v237_v51 = vsel %vm60_vm0, 1.0, %v349_v50  ;;  %v238_v52 = vsel %vm61_vm1, 1.0, %v349_v50  ;;  %v241_v57 = vsel %vm82_vm2, 1.0, %v349_v50  ;;  %v242_v58 = vsel %vm83_vm3, 1.0, %v349_v50 }
  0x89   :  { %v70_v48 = vpop.permute.xlu0 %69  ;;  %v92_v49 = vpop.permute.xlu1 %91 }
  0x8a   :  { %vm71_vm4 = vcmp.eq.s32.totalorder %v54_v40, %v70_v48  ;;  %vm72_vm5 = vcmp.eq.s32.totalorder %v55_v45, %v70_v48  ;;  %vm93_vm6 = vcmp.eq.s32.totalorder %v54_v40, %v92_v49  ;;  %vm94_vm7 = vcmp.eq.s32.totalorder %v55_v45, %v92_v49 }
  0x8b   :  { %v239_v53 = vsel %vm71_vm4, 1.0, %v349_v50  ;;  %v240_v54 = vsel %vm72_vm5, 1.0, %v349_v50  ;;  %v243_v59 = vsel %vm93_vm6, 1.0, %v349_v50  ;;  %v244_v60 = vsel %vm94_vm7, 1.0, %v349_v50 }
  0x8c   :  { %v77_v55 = vadd.f32 %v239_v53, %v237_v51  ;;  %v78_v56 = vadd.f32 %v240_v54, %v238_v52 }
  0x8e   :  { %v89_v61 = vadd.f32 %v242_v58, %v78_v56  ;;  %v88_v62 = vadd.f32 %v241_v57, %v77_v55 }
  0x90   :  { %v100_v63 = vadd.f32 %v244_v60, %v89_v61  ;;  %v99_v0 = vadd.f32 %v243_v59, %v88_v62 }
  0x92   :  { %151 = vmatmul.f32.vlgmr.msra.gmra.mxu0 %v99_v0  ;;  %245 = vmatmul.msk.f32.vlgmr.msra.gmra.mxu1 %vm131_vm8, %v100_v63 }
 0x10f   :  { %v152_v6 = vpop.f32.mrf.mxu0  ;;  %v172_v8 = vpop.f32.mrf.mxu1 }
 0x110   :  { %v153_v7 = vadd.f32 %v261_v5, %v152_v6 }
 0x112   :  { %v173_v9 = vadd.f32 %v172_v8, %v153_v7 }
 0x114   :  { %vm175_vm9 = vcmp.gt.f32.partialorder %v173_v9, 0.0  ;;  %v176_v10 = vmul.f32 0.01, %v173_v9 }
 0x116   :  { %v177_v11 = vsel %vm175_vm9, %v173_v9, %v176_v10 }
 0x117   :  { %214 = vmatmul.f32.vlgmr.msra.gmra.mxu2 %v177_v11 }
 0x19a   :  { %v215_v13 = vpop.f32.mrf.mxu2 }
 0x19b   :  { %v216_v14 = vadd.f32 %v262_v12, %v215_v13 }
 0x19d   :  { %218 = vst [vmem:[#allocation7] sm:$0xff] %v216_v14 }
 0x19e   :  { %229 = dma.vmem_to_hbm [thread:$0]  %s225_s9, 128, %s227_s12, [#allocation4]  }
 0x19f   :  { %339 = dma.done.wait [#allocation4], 128  }
 0x1a0   :  { %340 = vsyncadd [#allocation4], 4294967168 }
 0x1a1   :  { %234 = vsyncpa [#allocation3], 1 }
 0x1a2   :  { %235 = vsyncpa [#allocation6], 1 }
 0x1a3   :  { %236 = vsyncpa [#allocation4], 1 }

</bundles_post_ra>
